<compile_context>
chip_gen: v7x
topology: tpu7x:2x2x1
jax: 0.10.0
libtpu: 0.0.40
codegen_flags: <defaults>
</compile_context>

<pallas_src>
import functools

import jax
import jax.numpy as jnp
from jax.experimental import pallas as pl
from jax.experimental.pallas import tpu as pltpu

_MIB = 1024 * 1024


def _round_up(n, m):
    return ((n + m - 1) // m) * m


def _vmem_capacity_bytes():
    """Physical per-core VMEM (64 MiB on v7x, 128 MiB on v5e/v6e)."""
    try:
        info = pltpu.get_tpu_info()
        for attr in ("vmem_capacity_bytes", "vmem_size_bytes", "vmem_bytes"):
            val = getattr(info, attr, None)
            if val:
                return int(val)
    except Exception:
        pass
    return 64 * _MIB  # conservative fallback


def _usable_vmem():
    # Leave headroom for compiler-internal scratch: ~48 MiB on v7x, ~112 MiB
    # on v5e/v6e.
    return max(32 * _MIB, _vmem_capacity_bytes() - 16 * _MIB)


# ---------------------------------------------------------------------------
# Kernels
# ---------------------------------------------------------------------------

def _mlp_kernel_resident(x_ref, w1_ref, b1_ref, w2_ref, b2_ref, o_ref, *,
                         mxu_dtype):
    """Whole-weight-resident path: hidden = relu(x@W1+b1); out = hidden@W2+b2."""
    # mxu_dtype == input dtype by default (exact); bf16 optionally for the MXU.
    h = jnp.dot(x_ref[...].astype(mxu_dtype), w1_ref[...].astype(mxu_dtype),
                preferred_element_type=jnp.float32)
    h = jnp.maximum(h + b1_ref[...].astype(jnp.float32), 0.0)   # bias + ReLU (VPU)
    # NOTE: when mxu_dtype is bf16 this downcasts the layer-1 accumulator
    # before the second matmul (intentional MXU-speed precision choice).
    y = jnp.dot(h.astype(mxu_dtype), w2_ref[...].astype(mxu_dtype),
                preferred_element_type=jnp.float32)
    o_ref[...] = (y + b2_ref[...].astype(jnp.float32)).astype(o_ref.dtype)


def _mlp_kernel_ktiled(x_ref, w1_ref, b1_ref, w2_ref, b2_ref, o_ref, acc_ref, *,
                       mxu_dtype):
    """Hidden-dim (K) tiled path: streams W1 column-blocks / W2 row-blocks."""
    k = pl.program_id(1)

    @pl.when(k == 0)
    def _init():
        acc_ref[...] = jnp.zeros_like(acc_ref)

    h = jnp.dot(x_ref[...].astype(mxu_dtype), w1_ref[...].astype(mxu_dtype),
                preferred_element_type=jnp.float32)
    h = jnp.maximum(h + b1_ref[...].astype(jnp.float32), 0.0)
    acc_ref[...] += jnp.dot(h.astype(mxu_dtype), w2_ref[...].astype(mxu_dtype),
                            preferred_element_type=jnp.float32)

    @pl.when(k == pl.num_programs(1) - 1)
    def _finalize():
        o_ref[...] = (acc_ref[...]
                      + b2_ref[...].astype(jnp.float32)).astype(o_ref.dtype)


# ---------------------------------------------------------------------------
# Wrapper
# ---------------------------------------------------------------------------

def pad_params(w1, b1, w2, b2):
    """Zero-pad parameters to lane-dense (multiple-of-128 last dim) shapes.

    Call ONCE (outside the jitted forward) and reuse — padding every call
    wastes a full HBM read+write of the weights per forward.
    Padding is mathematically inert: padded features hit zero weight rows,
    padded hidden units are relu(0)=0 into zero W2 rows, padded outputs are
    sliced off.
    """
    F, H = w1.shape
    O = w2.shape[1]
    b1 = jnp.asarray(b1).reshape(1, -1)
    b2 = jnp.asarray(b2).reshape(1, -1)
    Fp, Hp, Op = _round_up(F, 128), _round_up(H, 128), _round_up(O, 128)
    w1_p = jnp.pad(w1, ((0, Fp - F), (0, Hp - H))) if (Fp, Hp) != (F, H) else w1
    b1_p = jnp.pad(b1, ((0, 0), (0, Hp - H))) if Hp != H else b1
    w2_p = jnp.pad(w2, ((0, Hp - H), (0, Op - O))) if (Hp, Op) != (H, O) else w2
    b2_p = jnp.pad(b2, ((0, 0), (0, Op - O))) if Op != O else b2
    return w1_p, b1_p, w2_p, b2_p


@functools.partial(jax.jit,
                   static_argnames=("n_output", "block_m", "k_block",
                                    "use_bf16_mxu"))
def mlp_forward(x, w1_p, b1_p, w2_p, b2_p, *, n_output, block_m=None,
                k_block=None, use_bf16_mxu=False):
    """Forward of Linear->ReLU->Linear.

    x: (B, F) unpadded; w1_p/b1_p/w2_p/b2_p: pre-padded params from pad_params.
    n_output: original (unpadded) output width.
    """
    B, F = x.shape
    Fp, Hp = w1_p.shape
    Op = w2_p.shape[1]
    dtype = x.dtype
    mxu_dtype = jnp.bfloat16 if use_bf16_mxu else dtype
    isz = lambda a: jnp.dtype(a.dtype).itemsize
    out_isz = jnp.dtype(dtype).itemsize

    vmem_cap = _usable_vmem()

    # Batch tile: multiple of the sublane packing; bigger tiles on 128-MiB
    # VMEM parts (v5e/v6e), 256 on v7x's 64 MiB.
    sub = 16 if dtype == jnp.bfloat16 else 8
    if block_m is None:
        block_m = 512 if vmem_cap >= 96 * _MIB else 256
    tm = _round_up(min(block_m, _round_up(B, sub)), sub)
    Bp = _round_up(B, tm)

    if (Bp, Fp) != (B, F):
        x_p = jnp.pad(x, ((0, Bp - B), (0, Fp - F)))
    else:
        x_p = x

    weight_bytes = (w1_p.size * isz(w1_p) + w2_p.size * isz(w2_p)
                    + b1_p.size * isz(b1_p) + b2_p.size * isz(b2_p))

    cost = pl.CostEstimate(
        flops=2 * Bp * (Fp * Hp + Hp * Op),
        transcendentals=0,
        bytes_accessed=int(x_p.size * isz(x_p) + weight_bytes + Bp * Op * out_isz),
    )

    grid_i = Bp // tm
    use_ktiled = (k_block is not None) or (weight_bytes > 0.4 * vmem_cap)

    if not use_ktiled:
        # ---- Resident-weight path: weights/biases single-buffered, whole in
        # VMEM; only x / out batch tiles are pipelined (double-buffered).
        vmem_bytes = (
            2 * tm * Fp * isz(x_p)        # double-buffered x tile
            + 2 * tm * Op * out_isz       # double-buffered out tile
            + weight_bytes                # resident weights + biases (1x)
            + 4 * tm * Hp + 4 * tm * Op   # f32 hidden / output intermediates
        )
        vmem_limit = int(min(vmem_cap,
                             max(int(1.25 * vmem_bytes) + 4 * _MIB, 32 * _MIB)))
        out_p = pl.pallas_call(
            functools.partial(_mlp_kernel_resident, mxu_dtype=mxu_dtype),
            out_shape=jax.ShapeDtypeStruct((Bp, Op), dtype),
            grid_spec=pl.GridSpec(
                grid=(grid_i,),
                in_specs=[
                    pl.BlockSpec((tm, Fp), lambda i: (i, 0)),           # x tile
                    pl.BlockSpec(memory_space=pltpu.MemorySpace.VMEM),  # W1
                    pl.BlockSpec(memory_space=pltpu.MemorySpace.VMEM),  # b1
                    pl.BlockSpec(memory_space=pltpu.MemorySpace.VMEM),  # W2
                    pl.BlockSpec(memory_space=pltpu.MemorySpace.VMEM),  # b2
                ],
                out_specs=pl.BlockSpec((tm, Op), lambda i: (i, 0)),
            ),
            compiler_params=pltpu.CompilerParams(
                dimension_semantics=("parallel",),   # batch axis -> megacore/2TC
                vmem_limit_bytes=vmem_limit,
            ),
            cost_estimate=cost,
        )(x_p, w1_p, b1_p, w2_p, b2_p)
    else:
        # ---- K-tiled path: stream W1 column-blocks / W2 row-blocks over the
        # hidden dim on a trailing "arbitrary" axis; f32 accumulator scratch.
        tk_want = k_block if k_block is not None else 512
        tk = min(_round_up(tk_want, 128), Hp)
        while Hp % tk != 0:      # keep tiles exact (no ragged reduction blocks)
            tk -= 128
        vmem_bytes = (
            2 * tm * Fp * isz(x_p)
            + 2 * (Fp * tk * isz(w1_p) + tk * Op * isz(w2_p))
            + 2 * tk * isz(b1_p) + Op * isz(b2_p)
            + 2 * tm * Op * out_isz
            + 4 * tm * Op          # f32 accumulator scratch
            + 4 * tm * tk          # f32 hidden-block intermediate
        )
        vmem_limit = int(min(vmem_cap,
                             max(int(1.25 * vmem_bytes) + 4 * _MIB, 32 * _MIB)))
        out_p = pl.pallas_call(
            functools.partial(_mlp_kernel_ktiled, mxu_dtype=mxu_dtype),
            out_shape=jax.ShapeDtypeStruct((Bp, Op), dtype),
            grid_spec=pltpu.PrefetchScalarGridSpec(
                num_scalar_prefetch=0,
                grid=(grid_i, Hp // tk),
                in_specs=[
                    pl.BlockSpec((tm, Fp), lambda i, k: (i, 0)),        # x tile
                    pl.BlockSpec((Fp, tk), lambda i, k: (0, k)),        # W1 k-blk
                    pl.BlockSpec((1, tk), lambda i, k: (0, k)),         # b1 k-blk
                    pl.BlockSpec((tk, Op), lambda i, k: (k, 0)),        # W2 k-blk
                    pl.BlockSpec(memory_space=pltpu.MemorySpace.VMEM),  # b2
                ],
                out_specs=pl.BlockSpec((tm, Op), lambda i, k: (i, 0)),
                scratch_shapes=[pltpu.VMEM((tm, Op), jnp.float32)],
            ),
            compiler_params=pltpu.CompilerParams(
                dimension_semantics=("parallel", "arbitrary"),
                vmem_limit_bytes=vmem_limit,
            ),
            cost_estimate=cost,
        )(x_p, w1_p, b1_p, w2_p, b2_p)

    if (Bp, Op) != (B, n_output):
        out_p = out_p[:B, :n_output]
    return out_p


def init_params(key, n_feature, n_hidden, n_output, dtype=jnp.float32):
    """Matches torch.nn.Linear default init U(-1/sqrt(fan_in), +1/sqrt(fan_in))."""
    k1, k2, k3, k4 = jax.random.split(key, 4)
    bound1 = 1.0 / (n_feature ** 0.5)
    bound2 = 1.0 / (n_hidden ** 0.5)
    # Stored as (in, out) so the kernel computes x @ W + b.
    w1 = jax.random.uniform(k1, (n_feature, n_hidden), dtype, -bound1, bound1)
    b1 = jax.random.uniform(k2, (1, n_hidden), dtype, -bound1, bound1)
    w2 = jax.random.uniform(k3, (n_hidden, n_output), dtype, -bound2, bound2)
    b2 = jax.random.uniform(k4, (1, n_output), dtype, -bound2, bound2)
    return w1, b1, w2, b2


if __name__ == "__main__":
    key = jax.random.PRNGKey(0)
    kx, kp, kx2, kp2 = jax.random.split(key, 4)

    # --- Test 1: resident-weight path (small Net shapes) ---------------------
    batch, n_feature, n_hidden, n_output = 8, 32, 64, 16
    x = jax.random.normal(kx, (batch, n_feature), jnp.float32)
    w1, b1, w2, b2 = init_params(kp, n_feature, n_hidden, n_output)
    params_p = pad_params(w1, b1, w2, b2)          # pad once, reuse every call

    out = mlp_forward(x, *params_p, n_output=n_output)
    jax.block_until_ready(out)

    ref = jnp.maximum(x @ w1 + b1, 0.0) @ w2 + b2
    assert out.shape == (batch, n_output)
    assert jnp.allclose(out, ref, atol=1e-5, rtol=1e-5)

    # --- Test 2: force the K-tiled (hidden-dim reduction) path ---------------
    batch2, f2, h2, o2 = 16, 64, 256, 32
    x2 = jax.random.normal(kx2, (batch2, f2), jnp.float32)
    w1b, b1b, w2b, b2b = init_params(kp2, f2, h2, o2)
    params2_p = pad_params(w1b, b1b, w2b, b2b)

    out2 = mlp_forward(x2, *params2_p, n_output=o2, k_block=128)
    jax.block_until_ready(out2)

    ref2 = jnp.maximum(x2 @ w1b + b1b, 0.0) @ w2b + b2b
    assert out2.shape == (batch2, o2)
    assert jnp.allclose(out2, ref2, atol=1e-4, rtol=1e-4)

    print("KERNEL_OK")
</pallas_src>

<mosaic_0001>
module attributes {stable_mosaic.version = 11 : i64} {
  func.func @_mlp_kernel_resident(%arg0: i32, %arg1: memref<8x128xf32, #tpu.memory_space<vmem>>, %arg2: memref<128x128xf32, #tpu.memory_space<vmem>>, %arg3: memref<1x128xf32, #tpu.memory_space<vmem>>, %arg4: memref<128x128xf32, #tpu.memory_space<vmem>>, %arg5: memref<1x128xf32, #tpu.memory_space<vmem>>, %arg6: memref<8x128xf32, #tpu.memory_space<vmem>>) attributes {dimension_semantics = [#tpu.dimension_semantics<parallel>], iteration_bounds = array<i64: 1>, scalar_prefetch = 0 : i64, scratch_operands = 0 : i64, tpu.core_type = #tpu.core_type<tc>, window_params = [{transform_indices = @transform_0, window_bounds = array<i64: 8, 128>}, {pipeline_mode = #tpu.pipeline_mode<synchronous>, transform_indices = @transform_1, window_bounds = array<i64: 128, 128>}, {pipeline_mode = #tpu.pipeline_mode<synchronous>, transform_indices = @transform_2, window_bounds = array<i64: 1, 128>}, {pipeline_mode = #tpu.pipeline_mode<synchronous>, transform_indices = @transform_3, window_bounds = array<i64: 128, 128>}, {pipeline_mode = #tpu.pipeline_mode<synchronous>, transform_indices = @transform_4, window_bounds = array<i64: 1, 128>}, {transform_indices = @transform_5, window_bounds = array<i64: 8, 128>}]} {
    %c0 = arith.constant 0 : index
    %c0_0 = arith.constant 0 : index
    %0 = vector.load %arg1[%c0, %c0_0] : memref<8x128xf32, #tpu.memory_space<vmem>>, vector<8x128xf32>
    %c0_1 = arith.constant 0 : index
    %c0_2 = arith.constant 0 : index
    %1 = vector.load %arg2[%c0_1, %c0_2] : memref<128x128xf32, #tpu.memory_space<vmem>>, vector<128x128xf32>
    %cst = arith.constant dense<0.000000e+00> : vector<8x128xf32>
    %2 = tpu.matmul %0, %1, %cst {dimension_numbers = #tpu.dot_dimension_numbers<[1], [0], [0], [1], [0, 0, 1, 1], [], []>} : vector<8x128xf32>, vector<128x128xf32>, vector<8x128xf32> -> vector<8x128xf32>
    %c0_3 = arith.constant 0 : index
    %c0_4 = arith.constant 0 : index
    %3 = vector.load %arg3[%c0_3, %c0_4] : memref<1x128xf32, #tpu.memory_space<vmem>>, vector<1x128xf32>
    %4 = vector.broadcast %3 : vector<1x128xf32> to vector<8x128xf32>
    %5 = arith.addf %2, %4 : vector<8x128xf32>
    %cst_5 = arith.constant 0.000000e+00 : f32
    %6 = vector.broadcast %cst_5 : f32 to vector<8x128xf32>
    %7 = arith.maximumf %5, %6 : vector<8x128xf32>
    %c0_6 = arith.constant 0 : index
    %c0_7 = arith.constant 0 : index
    %8 = vector.load %arg4[%c0_6, %c0_7] : memref<128x128xf32, #tpu.memory_space<vmem>>, vector<128x128xf32>
    %cst_8 = arith.constant dense<0.000000e+00> : vector<8x128xf32>
    %9 = tpu.matmul %7, %8, %cst_8 {dimension_numbers = #tpu.dot_dimension_numbers<[1], [0], [0], [1], [0, 0, 1, 1], [], []>} : vector<8x128xf32>, vector<128x128xf32>, vector<8x128xf32> -> vector<8x128xf32>
    %c0_9 = arith.constant 0 : index
    %c0_10 = arith.constant 0 : index
    %10 = vector.load %arg5[%c0_9, %c0_10] : memref<1x128xf32, #tpu.memory_space<vmem>>, vector<1x128xf32>
    %11 = vector.broadcast %10 : vector<1x128xf32> to vector<8x128xf32>
    %12 = arith.addf %9, %11 : vector<8x128xf32>
    %c0_11 = arith.constant 0 : index
    %c0_12 = arith.constant 0 : index
    %13 = vector.load %arg6[%c0_11, %c0_12] : memref<8x128xf32, #tpu.memory_space<vmem>>, vector<8x128xf32>
    tpu.vector_store %arg6[%c0_11, %c0_12], %12 {strides = array<i32>} : memref<8x128xf32, #tpu.memory_space<vmem>>, vector<8x128xf32>,
    return
  }
  func.func @transform_0(%arg0: i32) -> (i32, i32) {
    %c0_i32 = arith.constant 0 : i32
    %c0_i32_0 = arith.constant 0 : i32
    return %arg0, %c0_i32 : i32, i32
  }
  func.func @transform_1(%arg0: i32) -> (i32, i32) {
    %c0_i32 = arith.constant 0 : i32
    %c0_i32_0 = arith.constant 0 : i32
    %c0_i32_1 = arith.constant 0 : i32
    return %c0_i32, %c0_i32_0 : i32, i32
  }
  func.func @transform_2(%arg0: i32) -> (i32, i32) {
    %c0_i32 = arith.constant 0 : i32
    %c0_i32_0 = arith.constant 0 : i32
    %c0_i32_1 = arith.constant 0 : i32
    return %c0_i32, %c0_i32_0 : i32, i32
  }
  func.func @transform_3(%arg0: i32) -> (i32, i32) {
    %c0_i32 = arith.constant 0 : i32
    %c0_i32_0 = arith.constant 0 : i32
    %c0_i32_1 = arith.constant 0 : i32
    return %c0_i32, %c0_i32_0 : i32, i32
  }
  func.func @transform_4(%arg0: i32) -> (i32, i32) {
    %c0_i32 = arith.constant 0 : i32
    %c0_i32_0 = arith.constant 0 : i32
    %c0_i32_1 = arith.constant 0 : i32
    return %c0_i32, %c0_i32_0 : i32, i32
  }
  func.func @transform_5(%arg0: i32) -> (i32, i32) {
    %c0_i32 = arith.constant 0 : i32
    %c0_i32_0 = arith.constant 0 : i32
    return %arg0, %c0_i32 : i32, i32
  }
}

</mosaic_0001>

<bundles_post_ra>
// kernel: mlp_forward.1
= control target key start
LH: loop header
LB: loop body
LE: loop exit
PB: predicated region body
PF: predicated region fallthrough
CT: control target
= control target key end

     0   :  { %10 = vsyncpa [#allocation3], 0  ;;  %s587_s0 = inlined_call_operand.vmem [shape: f32[8,128], index: 0, kind: input, shape index: {}]   ;;  %s588_s1 = inlined_call_operand.hbm [shape: f32[128,128], index: 1, kind: input, shape index: {}]   ;;  %s589_s2 = inlined_call_operand.vmem [shape: f32[1,128], index: 2, kind: input, shape index: {}]   ;;  %s590_s3 = inlined_call_operand.hbm [shape: f32[128,128], index: 3, kind: input, shape index: {}]   ;;  %s591_s4 = inlined_call_operand.vmem [shape: f32[1,128], index: 4, kind: input, shape index: {}]   ;;  %s592_s5 = inlined_call_operand.hbm [shape: f32[8,128], index: 5, kind: output, shape index: {}]  }
   0x1   :  { %11 = vsyncpa [#allocation6], 0 }
   0x2   :  { %12 = vsyncpa [#allocation4], 0  ;;  %s488_s18 = smov [#allocation2]   ;;  %s416_s22 = scalar_lea.hbm %s588_s1, 2048 }
   0x3   :  { %s20_s19 = sshll.u32 %s488_s18, 4  ;;  %p417_p0 = scmp.ne.s32.totalorder %s588_s1, %s416_s22  ;;  %s21_s19 = int_to_ptr.vmem [resolvable:$true] %s20_s19 }
   0x4   :  { %p420_p1 = scmp.lt.u32.totalorder %s416_s22, %s588_s1 }
   0x6   :  { %p422_p2 = pnand %p420_p1, %p417_p0 }
   0x8   :  { %425 = shalt.err (!%p422_p2)
}
   0x9   :  { %s426_s27 = scalar_lea.vmem %s21_s19, 2048  ;;  %p431_p4 = scmp.lt.s32.totalorder %s21_s19, %s21_s19 }
   0xa   :  { %p427_p3 = scmp.ne.s32.totalorder %s21_s19, %s426_s27  ;;  %p432_p5 = scmp.lt.s32.totalorder %s426_s27, %s426_s27 }
   0xc   :  { %p433_p6 = por %p432_p5, %p431_p4 }
   0xe   :  { %p434_p7 = pnand %p433_p6, %p427_p3 }
  0x10   :  { %437 = shalt.err (!%p434_p7)
}
  0x11   :  { %s489_s28 = smov 128   ;;  %s490_s29 = smov 8  }
  0x12   :  { %26 = dma.hbm_to_vmem [thread:$0]  %s588_s1, 2048, %s21_s19, [#allocation3], %s489_s28, %s489_s28, %s490_s29  }
  0x13   :  { %s491_s7 = smov [#allocation5]   ;;  %s438_s11 = scalar_lea.hbm %s590_s3, 2048 }
  0x14   :  { %s34_s8 = sshll.u32 %s491_s7, 4  ;;  %p439_p8 = scmp.ne.s32.totalorder %s590_s3, %s438_s11  ;;  %s35_s8 = int_to_ptr.vmem [resolvable:$true] %s34_s8 }
  0x15   :  { %p442_p9 = scmp.lt.u32.totalorder %s438_s11, %s590_s3 }
  0x17   :  { %p444_p10 = pnand %p442_p9, %p439_p8 }
  0x19   :  { %447 = shalt.err (!%p444_p10)
}
  0x1a   :  { %s448_s16 = scalar_lea.vmem %s35_s8, 2048  ;;  %p453_p12 = scmp.lt.s32.totalorder %s35_s8, %s35_s8 }
  0x1b   :  { %p449_p11 = scmp.ne.s32.totalorder %s35_s8, %s448_s16  ;;  %p454_p13 = scmp.lt.s32.totalorder %s448_s16, %s448_s16 }
  0x1d   :  { %p455_p0 = por %p454_p13, %p453_p12 }
  0x1f   :  { %p456_p1 = pnand %p455_p0, %p449_p11 }
  0x21   :  { %459 = shalt.err (!%p456_p1)
}
  0x22   :  { %40 = dma.hbm_to_vmem [thread:$0]  %s590_s3, 2048, %s35_s8, [#allocation6], %s489_s28, %s489_s28, %s490_s29  }
  0x23   :  { %482 = dma.done.wait [#allocation3], 2048  }
  0x24   :  { %483 = vsyncadd [#allocation3], 4294965248 }
  0x25   :  { %484 = dma.done.wait [#allocation6], 2048  }
  0x26   :  { %485 = vsyncadd [#allocation6], 4294965248  ;;  %v492_v0 = vmov 0.0|0.0   ;;  %vm493_vm0 = vmmov 0   ;;  %v494_v1 = vmov 0.0   ;;  %v50_v2 = vld [vmem:[#allocation2] sm:$0xff] }
  0x27   :  { %360 = vmatprep.subr.bf16.mxu0 %v492_v0  ;;  %322 = vmatprep.mubr.msk.f32.mxu0 %vm493_vm0, %v494_v1  ;;  %v51_v3 = vld [vmem:[#allocation2 + $0x8] sm:$0xff]  ;;  %v52_v4 = vld [vmem:[#allocation2 + $0x10] sm:$0xff]  ;;  %v53_v6 = vld [vmem:[#allocation2 + $0x18] sm:$0xff] }
  0x28   :  { %384 = vmatprep.subr.bf16.mxu1 %v492_v0  ;;  %357 = vmatprep.mubr.msk.f32.mxu1 %vm493_vm0, %v494_v1  ;;  %v361_v5 = vpack.c.bf16 %v51_v3, %v50_v2  ;;  %v364_v7 = vpack.c.bf16 %v53_v6, %v52_v4  ;;  %v54_v8 = vld [vmem:[#allocation2 + $0x20] sm:$0xff]  ;;  %v55_v9 = vld [vmem:[#allocation2 + $0x28] sm:$0xff]  ;;  %v146_v12 = vld [vmem:[#allocation5 + $0x10] sm:$0xff] }
  0x29   :  { %v144_v10 = vld [vmem:[#allocation5] sm:$0xff]  ;;  %v145_v11 = vld [vmem:[#allocation5 + $0x8] sm:$0xff]  ;;  %v147_v13 = vld [vmem:[#allocation5 + $0x18] sm:$0xff]  ;;  %v367_v14 = vpack.c.bf16 %v55_v9, %v54_v8 }
  0x2a   :  { %362 = vmatpush3.bf16.msra.mxu0 %v361_v5  ;;  %v385_v15 = vpack.c.bf16 %v145_v11, %v144_v10  ;;  %v56_v16 = vld [vmem:[#allocation2 + $0x30] sm:$0xff]  ;;  %v57_v17 = vld [vmem:[#allocation2 + $0x38] sm:$0xff]  ;;  %v388_v18 = vpack.c.bf16 %v147_v13, %v146_v12  ;;  %v148_v19 = vld [vmem:[#allocation5 + $0x20] sm:$0xff] }
  0x2b   :  { %363 = vmatprep.subr.bf16.mxu0 %v492_v0  ;;  %v149_v20 = vld [vmem:[#allocation5 + $0x28] sm:$0xff]  ;;  %v370_v21 = vpack.c.bf16 %v57_v17, %v56_v16  ;;  %v58_v22 = vld [vmem:[#allocation2 + $0x40] sm:$0xff]  ;;  %v150_v25 = vld [vmem:[#allocation5 + $0x30] sm:$0xff] }
  0x2c   :  { %386 = vmatpush3.bf16.msra.mxu1 %v385_v15  ;;  %v59_v23 = vld [vmem:[#allocation2 + $0x48] sm:$0xff]  ;;  %v391_v24 = vpack.c.bf16 %v149_v20, %v148_v19  ;;  %v151_v26 = vld [vmem:[#allocation5 + $0x38] sm:$0xff]  ;;  %v60_v28 = vld [vmem:[#allocation2 + $0x50] sm:$0xff] }
  0x2d   :  { %387 = vmatprep.subr.bf16.mxu1 %v492_v0  ;;  %v373_v27 = vpack.c.bf16 %v59_v23, %v58_v22  ;;  %v61_v29 = vld [vmem:[#allocation2 + $0x58] sm:$0xff]  ;;  %v394_v30 = vpack.c.bf16 %v151_v26, %v150_v25  ;;  %v152_v31 = vld [vmem:[#allocation5 + $0x40] sm:$0xff]  ;;  %v153_v32 = vld [vmem:[#allocation5 + $0x48] sm:$0xff] }
  0x2e   :  { %365 = vmatpush3.bf16.msra.mxu0 %v364_v7  ;;  %v376_v33 = vpack.c.bf16 %v61_v29, %v60_v28  ;;  %v62_v34 = vld [vmem:[#allocation2 + $0x60] sm:$0xff]  ;;  %v63_v35 = vld [vmem:[#allocation2 + $0x68] sm:$0xff]  ;;  %v397_v36 = vpack.c.bf16 %v153_v32, %v152_v31  ;;  %v154_v37 = vld [vmem:[#allocation5 + $0x50] sm:$0xff] }
  0x2f   :  { %366 = vmatprep.subr.bf16.mxu0 %v492_v0  ;;  %v155_v38 = vld [vmem:[#allocation5 + $0x58] sm:$0xff]  ;;  %v379_v39 = vpack.c.bf16 %v63_v35, %v62_v34  ;;  %v64_v40 = vld [vmem:[#allocation2 + $0x70] sm:$0xff]  ;;  %v156_v43 = vld [vmem:[#allocation5 + $0x60] sm:$0xff] }
  0x30   :  { %389 = vmatpush3.bf16.msra.mxu1 %v388_v18  ;;  %v65_v41 = vld [vmem:[#allocation2 + $0x78] sm:$0xff]  ;;  %v400_v42 = vpack.c.bf16 %v155_v38, %v154_v37  ;;  %v157_v44 = vld [vmem:[#allocation5 + $0x68] sm:$0xff]  ;;  %v158_v48 = vld [vmem:[#allocation5 + $0x70] sm:$0xff] }
  0x31   :  { %390 = vmatprep.subr.bf16.mxu1 %v492_v0  ;;  %v382_v45 = vpack.c.bf16 %v65_v41, %v64_v40  ;;  %v403_v46 = vpack.c.bf16 %v157_v44, %v156_v43  ;;  %v49_v47 = vld [vmem:[%s587_s0] sm:$0xff]  ;;  %s495_s0 = smov [#allocation7]  }
  0x32   :  { %368 = vmatpush3.bf16.msra.mxu0 %v367_v14  ;;  %v159_v49 = vld [vmem:[#allocation5 + $0x78] sm:$0xff]  ;;  %s244_s23 = sshll.u32 %s495_s0, 4  ;;  %s245_s23 = int_to_ptr.vmem [resolvable:$true] %s244_s23 }
  0x33   :  { %369 = vmatprep.subr.bf16.mxu0 %v492_v0  ;;  %v406_v50 = vpack.c.bf16 %v159_v49, %v158_v48  ;;  %v254_v51 = vld [vmem:[%s589_s2] ss:$0 sm:$0xff]  ;;  %s460_s24 = scalar_lea.vmem %s245_s23, 128  ;;  %p465_p3 = scmp.lt.s32.totalorder %s245_s23, %s245_s23 }
  0x34   :  { %392 = vmatpush3.bf16.msra.mxu1 %v391_v24  ;;  %v255_v56 = vld [vmem:[%s591_s4] ss:$0 sm:$0xff]  ;;  %p461_p2 = scmp.ne.s32.totalorder %s245_s23, %s460_s24  ;;  %p466_p4 = scmp.lt.s32.totalorder %s460_s24, %s460_s24 }
  0x35   :  { %393 = vmatprep.subr.bf16.mxu1 %v492_v0 }
  0x36   :  { %371 = vmatpush3.bf16.msra.mxu0 %v370_v21  ;;  %p467_p5 = por %p466_p4, %p465_p3 }
  0x37   :  { %372 = vmatprep.subr.bf16.mxu0 %v492_v0 }
  0x38   :  { %395 = vmatpush3.bf16.msra.mxu1 %v394_v30  ;;  %p468_p6 = pnand %p467_p5, %p461_p2 }
  0x39   :  { %396 = vmatprep.subr.bf16.mxu1 %v492_v0 }
  0x3a   :  { %374 = vmatpush3.bf16.msra.mxu0 %v373_v27 }
  0x3b   :  { %375 = vmatprep.subr.bf16.mxu0 %v492_v0 }
  0x3c   :  { %398 = vmatpush3.bf16.msra.mxu1 %v397_v36 }
  0x3d   :  { %399 = vmatprep.subr.bf16.mxu1 %v492_v0 }
  0x3e   :  { %377 = vmatpush3.bf16.msra.mxu0 %v376_v33 }
  0x3f   :  { %378 = vmatprep.subr.bf16.mxu0 %v492_v0 }
  0x40   :  { %401 = vmatpush3.bf16.msra.mxu1 %v400_v42 }
  0x41   :  { %402 = vmatprep.subr.bf16.mxu1 %v492_v0 }
  0x42   :  { %380 = vmatpush3.bf16.msra.mxu0 %v379_v39 }
  0x43   :  { %381 = vmatprep.subr.bf16.mxu0 %v492_v0 }
  0x44   :  { %404 = vmatpush3.bf16.msra.mxu1 %v403_v46 }
  0x45   :  { %405 = vmatprep.subr.bf16.mxu1 %v492_v0 }
  0x46   :  { %383 = vmatpush3.bf16.msra.mxu0 %v382_v45 }
  0x48   :  { %407 = vmatpush3.bf16.msra.mxu1 %v406_v50 }
  0x49   :  { %323 = vmatmul.mubr.f32.vlgmr.msra.gmra.mrb[0].mxu0 %v49_v47 }
 0x11c   :  { %v139_v52 = vpop.f32.mrb[0].mxu0 }
 0x11d   :  { %v140_v53 = vadd.f32 %v254_v51, %v139_v52  ;;  %v324_v54 = vpop.f32.mrb[1].mxu0 }
 0x11f   :  { %v143_v55 = vmax.f32 %v140_v53, 0.0 }
 0x121   :  { %358 = vmatmul.mubr.f32.vlgmr.msra.gmra.mrb[0].mxu1 %v143_v55 }
 0x1f4   :  { %v233_v57 = vpop.f32.mrb[0].mxu1 }
 0x1f5   :  { %v234_v58 = vadd.f32 %v255_v56, %v233_v57  ;;  %v359_v59 = vpop.f32.mrb[1].mxu1 }
 0x1f7   :  { %237 = vst [vmem:[#allocation7] sm:$0xff] %v234_v58 }
 0x1f8   :  { %471 = shalt.err (!%p468_p6)
}
 0x1f9   :  { %s472_s26 = scalar_lea.hbm %s592_s5, 128 }
 0x1fa   :  { %p473_p7 = scmp.ne.s32.totalorder %s592_s5, %s472_s26  ;;  %p476_p8 = scmp.lt.u32.totalorder %s472_s26, %s592_s5 }
 0x1fc   :  { %p478_p9 = pnand %p476_p8, %p473_p7 }
 0x1fe   :  { %481 = shalt.err (!%p478_p9)
}
 0x1ff   :  { %247 = dma.vmem_to_hbm [thread:$0]  %s245_s23, 128, %s592_s5, [#allocation4]  }
 0x200   :  { %486 = dma.done.wait [#allocation4], 128  }
 0x201   :  { %487 = vsyncadd [#allocation4], 4294967168 }
 0x202   :  { %251 = vsyncpa [#allocation3], 1 }
 0x203   :  { %252 = vsyncpa [#allocation6], 1 }
 0x204   :  { %253 = vsyncpa [#allocation4], 1 }

</bundles_post_ra>
